<compile_context>
chip_gen: v6e
topology: v6e:2x2x1
jax: 0.10.0
libtpu: 0.0.40
codegen_flags: <defaults>
</compile_context>

<pallas_src>
import jax
import jax.numpy as jnp
import numpy as np
from jax.experimental import pallas as pl
from jax.experimental.pallas import tpu as pltpu


def _gru_decoder_kernel(xf_ref, h0_ref, wi_ref, wh_ref, bias_ref, wo_ref, bo_ref,
                        y_ref, hall_scratch):
    # xf_ref:   (T*Bp, I)   all time-step inputs, flattened over time (batch padded)
    # h0_ref:   (Bp, H)     initial hidden state (batch padded)
    # wi_ref:   (I, 3H)     packed input->hidden weights, columns [r | z | n]
    # wh_ref:   (H, 3H)     packed hidden->hidden weights, columns [r | z | n]
    # bias_ref: (2, 3H)     row 0: b_ih+b_hh for r,z and b_ih for n (hoisted into gx)
    #                       row 1: zeros for r,z and b_hh for n (stays with gh)
    # wo_ref:   (H, Op)     output Linear weight, pre-transposed, lane-padded
    # bo_ref:   (1, Op)     output Linear bias, lane-padded
    # y_ref:    (T*Bp, Op)  outputs, flattened over time
    # hall_scratch: (T*Bp, H) f32, all hidden states (for the batched Linear)
    Bp, H = h0_ref.shape
    T = xf_ref.shape[0] // Bp

    bias = bias_ref[...]
    bx = bias[0:1, :]                                  # (1, 3H)
    bh = bias[1:2, :]                                  # (1, 3H), nonzero only for n

    # ---- hoisted, non-recurrent part: one packed matmul over all T steps ----
    gx = jnp.dot(xf_ref[...], wi_ref[...],
                 preferred_element_type=jnp.float32) + bx   # (T*Bp, 3H)

    wh = wh_ref[...]

    # ---- serial recurrence over T (fully unrolled; T is small and static) ---
    h = h0_ref[...]
    for t in range(T):
        lo = t * Bp
        gx_t = gx[lo:lo + Bp, :]                       # sublane-aligned (Bp = 8)
        gh = jnp.dot(h, wh, preferred_element_type=jnp.float32) + bh  # one MXU op
        rz = jax.nn.sigmoid(gx_t[:, :2 * H] + gh[:, :2 * H])
        r = rz[:, :H]
        z = rz[:, H:]
        n = jnp.tanh(gx_t[:, 2 * H:] + r * gh[:, 2 * H:])
        h = (1.0 - z) * n + z * h
        hall_scratch[lo:lo + Bp, :] = h                # full-sublane aligned store

    # ---- batched output Linear over all T*Bp hidden states, one dense store --
    y = jnp.dot(hall_scratch[...], wo_ref[...],
                preferred_element_type=jnp.float32) + bo_ref[...]
    y_ref[...] = y.astype(y_ref.dtype)


def decoder_forward(x, h0, params):
    """x: (T, B, I), h0: (1, B, H). Returns (y,) with y: (T, B, O) and O == I."""
    T, B, I = x.shape
    H = h0.shape[-1]
    O = params["w_out"].shape[0]
    assert O == I, "GRU input size must equal Linear output size (per module)"

    Bp = max(8, -(-B // 8) * 8)          # pad batch to a full sublane group
    Op = max(128, -(-O // 128) * 128)    # pad output lanes for a dense final store

    w_ih, w_hh = params["w_ih"], params["w_hh"]   # (3H, I), (3H, H); gate order r,z,n
    b_ih, b_hh = params["b_ih"], params["b_hh"]   # (3H,), (3H,)

    # Packed, pre-transposed weights: columns grouped [r | z | n].
    wi_rzn = w_ih.T                               # (I, 3H)
    wh_rzn = w_hh.T                               # (H, 3H)

    # Bias slab: row 0 is hoisted into gx (b_ih+b_hh for r,z; b_ih for n);
    #            row 1 stays with gh (only b_hh of n — it sits inside r*(.)).
    bx = jnp.concatenate([b_ih[:2 * H] + b_hh[:2 * H], b_ih[2 * H:]])
    bh = jnp.concatenate([jnp.zeros((2 * H,), b_hh.dtype), b_hh[2 * H:]])
    bias_slab = jnp.stack([bx, bh])               # (2, 3H)

    # Output Linear, zero-padded to Op lanes (padded columns must be zero so
    # garbage never leaks into the sliced output).
    wo = jnp.zeros((H, Op), x.dtype).at[:, :O].set(params["w_out"].T)
    bo = jnp.zeros((1, Op), x.dtype).at[:, :O].set(params["b_out"])

    # Zero-pad the batch to Bp and flatten time into rows (XLA side).
    xp = jnp.zeros((T, Bp, I), x.dtype).at[:, :B, :].set(x).reshape(T * Bp, I)
    h0p = jnp.zeros((Bp, H), h0.dtype).at[:B, :].set(h0[0])

    vmem = pl.BlockSpec(memory_space=pltpu.MemorySpace.VMEM)
    y_flat = pl.pallas_call(
        _gru_decoder_kernel,
        out_shape=jax.ShapeDtypeStruct((T * Bp, Op), x.dtype),
        in_specs=[vmem] * 7,
        out_specs=vmem,
        scratch_shapes=[pltpu.VMEM((T * Bp, H), jnp.float32)],
    )(xp, h0p, wi_rzn, wh_rzn, bias_slab, wo, bo)

    y = y_flat.reshape(T, Bp, Op)[:, :B, :O]
    return (y,)


def decoder_reference(x, h0, params):
    """Pure-JAX reference matching torch.nn.GRU + nn.Linear semantics."""
    H = h0.shape[-1]
    w_ih, w_hh = params["w_ih"], params["w_hh"]
    b_ih, b_hh = params["b_ih"], params["b_hh"]
    w_out, b_out = params["w_out"], params["b_out"]

    def step(h, xt):
        gx = xt @ w_ih.T + b_ih
        gh = h @ w_hh.T + b_hh
        r = jax.nn.sigmoid(gx[:, :H] + gh[:, :H])
        z = jax.nn.sigmoid(gx[:, H:2 * H] + gh[:, H:2 * H])
        n = jnp.tanh(gx[:, 2 * H:] + r * gh[:, 2 * H:])
        h_new = (1.0 - z) * n + z * h
        return h_new, h_new @ w_out.T + b_out

    _, ys = jax.lax.scan(step, h0[0], x)
    return ys


if __name__ == "__main__":
    # Small shapes consistent with the module:
    #   hidden_size=32, output_size=16 (== GRU input size), seq=8, batch=4
    hidden_size, output_size = 32, 16
    T, B = 8, 4

    key = jax.random.PRNGKey(0)
    ks = jax.random.split(key, 8)
    scale = 1.0 / np.sqrt(hidden_size)
    params = {
        # PyTorch GRU parameter shapes (gate order r, z, n):
        "w_ih": jax.random.uniform(ks[0], (3 * hidden_size, output_size),
                                   jnp.float32, -scale, scale),
        "w_hh": jax.random.uniform(ks[1], (3 * hidden_size, hidden_size),
                                   jnp.float32, -scale, scale),
        "b_ih": jax.random.uniform(ks[2], (3 * hidden_size,),
                                   jnp.float32, -scale, scale),
        "b_hh": jax.random.uniform(ks[3], (3 * hidden_size,),
                                   jnp.float32, -scale, scale),
        # nn.Linear(hidden_size, output_size)
        "w_out": jax.random.uniform(ks[4], (output_size, hidden_size),
                                    jnp.float32, -scale, scale),
        "b_out": jax.random.uniform(ks[5], (output_size,),
                                    jnp.float32, -scale, scale),
    }

    x = jax.random.normal(ks[6], (T, B, output_size), jnp.float32)
    h0 = jax.random.normal(ks[7], (1, B, hidden_size), jnp.float32)

    (y_kernel,) = decoder_forward(x, h0, params)
    y_kernel = jax.block_until_ready(y_kernel)

    y_ref = decoder_reference(x, h0, params)
    np.testing.assert_allclose(np.asarray(y_kernel), np.asarray(y_ref),
                               rtol=1e-5, atol=1e-5)
    print("KERNEL_OK")
</pallas_src>

<mosaic_0001>
module attributes {stable_mosaic.version = 11 : i64} {
  func.func @_gru_decoder_kernel(%arg0: memref<64x16xf32, #tpu.memory_space<vmem>>, %arg1: memref<8x32xf32, #tpu.memory_space<vmem>>, %arg2: memref<16x96xf32, #tpu.memory_space<vmem>>, %arg3: memref<32x96xf32, #tpu.memory_space<vmem>>, %arg4: memref<2x96xf32, #tpu.memory_space<vmem>>, %arg5: memref<32x128xf32, #tpu.memory_space<vmem>>, %arg6: memref<1x128xf32, #tpu.memory_space<vmem>>, %arg7: memref<64x128xf32, #tpu.memory_space<vmem>>, %arg8: memref<64x32xf32, #tpu.memory_space<vmem>>) attributes {dimension_semantics = [], scalar_prefetch = 0 : i64, scratch_operands = 1 : i64, tpu.core_type = #tpu.core_type<tc>} {
    %c0 = arith.constant 0 : index
    %c0_0 = arith.constant 0 : index
    %0 = vector.load %arg4[%c0, %c0_0] : memref<2x96xf32, #tpu.memory_space<vmem>>, vector<2x96xf32>
    %1 = vector.extract_strided_slice %0 {offsets = [0, 0], sizes = [1, 96], strides = [1, 1]} : vector<2x96xf32> to vector<1x96xf32>
    %2 = vector.extract_strided_slice %0 {offsets = [1, 0], sizes = [1, 96], strides = [1, 1]} : vector<2x96xf32> to vector<1x96xf32>
    %c0_1 = arith.constant 0 : index
    %c0_2 = arith.constant 0 : index
    %3 = vector.load %arg0[%c0_1, %c0_2] : memref<64x16xf32, #tpu.memory_space<vmem>>, vector<64x16xf32>
    %c0_3 = arith.constant 0 : index
    %c0_4 = arith.constant 0 : index
    %4 = vector.load %arg2[%c0_3, %c0_4] : memref<16x96xf32, #tpu.memory_space<vmem>>, vector<16x96xf32>
    %cst = arith.constant dense<0.000000e+00> : vector<64x96xf32>
    %5 = tpu.matmul %3, %4, %cst {dimension_numbers = #tpu.dot_dimension_numbers<[1], [0], [0], [1], [0, 0, 1, 1], [], []>} : vector<64x16xf32>, vector<16x96xf32>, vector<64x96xf32> -> vector<64x96xf32>
    %6 = vector.broadcast %1 : vector<1x96xf32> to vector<64x96xf32>
    %7 = arith.addf %5, %6 : vector<64x96xf32>
    %c0_5 = arith.constant 0 : index
    %c0_6 = arith.constant 0 : index
    %8 = vector.load %arg3[%c0_5, %c0_6] : memref<32x96xf32, #tpu.memory_space<vmem>>, vector<32x96xf32>
    %c0_7 = arith.constant 0 : index
    %c0_8 = arith.constant 0 : index
    %9 = vector.load %arg1[%c0_7, %c0_8] : memref<8x32xf32, #tpu.memory_space<vmem>>, vector<8x32xf32>
    %10 = vector.extract_strided_slice %7 {offsets = [0, 0], sizes = [8, 96], strides = [1, 1]} : vector<64x96xf32> to vector<8x96xf32>
    %cst_9 = arith.constant dense<0.000000e+00> : vector<8x96xf32>
    %11 = tpu.matmul %9, %8, %cst_9 {dimension_numbers = #tpu.dot_dimension_numbers<[1], [0], [0], [1], [0, 0, 1, 1], [], []>} : vector<8x32xf32>, vector<32x96xf32>, vector<8x96xf32> -> vector<8x96xf32>
    %12 = vector.broadcast %2 : vector<1x96xf32> to vector<8x96xf32>
    %13 = arith.addf %11, %12 : vector<8x96xf32>
    %14 = vector.extract_strided_slice %10 {offsets = [0, 0], sizes = [8, 64], strides = [1, 1]} : vector<8x96xf32> to vector<8x64xf32>
    %15 = vector.extract_strided_slice %13 {offsets = [0, 0], sizes = [8, 64], strides = [1, 1]} : vector<8x96xf32> to vector<8x64xf32>
    %16 = arith.addf %14, %15 : vector<8x64xf32>
    %17 = arith.negf %16 : vector<8x64xf32>
    %18 = math.exp %17 : vector<8x64xf32>
    %cst_10 = arith.constant 1.000000e+00 : f32
    %19 = vector.broadcast %cst_10 : f32 to vector<8x64xf32>
    %20 = arith.addf %19, %18 : vector<8x64xf32>
    %21 = arith.divf %19, %20 : vector<8x64xf32>
    %22 = vector.extract_strided_slice %21 {offsets = [0, 0], sizes = [8, 32], strides = [1, 1]} : vector<8x64xf32> to vector<8x32xf32>
    %23 = vector.extract_strided_slice %21 {offsets = [0, 32], sizes = [8, 32], strides = [1, 1]} : vector<8x64xf32> to vector<8x32xf32>
    %24 = vector.extract_strided_slice %10 {offsets = [0, 64], sizes = [8, 32], strides = [1, 1]} : vector<8x96xf32> to vector<8x32xf32>
    %25 = vector.extract_strided_slice %13 {offsets = [0, 64], sizes = [8, 32], strides = [1, 1]} : vector<8x96xf32> to vector<8x32xf32>
    %26 = arith.mulf %22, %25 : vector<8x32xf32>
    %27 = arith.addf %24, %26 : vector<8x32xf32>
    %28 = math.tanh %27 : vector<8x32xf32>
    %cst_11 = arith.constant 1.000000e+00 : f32
    %29 = vector.broadcast %cst_11 : f32 to vector<8x32xf32>
    %30 = arith.subf %29, %23 : vector<8x32xf32>
    %31 = arith.mulf %30, %28 : vector<8x32xf32>
    %32 = arith.mulf %23, %9 : vector<8x32xf32>
    %33 = arith.addf %31, %32 : vector<8x32xf32>
    %c0_12 = arith.constant 0 : index
    %c0_13 = arith.constant 0 : index
    %34 = vector.load %arg8[%c0_12, %c0_13] : memref<64x32xf32, #tpu.memory_space<vmem>>, vector<8x32xf32>
    tpu.vector_store %arg8[%c0_12, %c0_13], %33 {strides = array<i32>} : memref<64x32xf32, #tpu.memory_space<vmem>>, vector<8x32xf32>,
    %35 = vector.extract_strided_slice %7 {offsets = [8, 0], sizes = [8, 96], strides = [1, 1]} : vector<64x96xf32> to vector<8x96xf32>
    %cst_14 = arith.constant dense<0.000000e+00> : vector<8x96xf32>
    %36 = tpu.matmul %33, %8, %cst_14 {dimension_numbers = #tpu.dot_dimension_numbers<[1], [0], [0], [1], [0, 0, 1, 1], [], []>} : vector<8x32xf32>, vector<32x96xf32>, vector<8x96xf32> -> vector<8x96xf32>
    %37 = vector.broadcast %2 : vector<1x96xf32> to vector<8x96xf32>
    %38 = arith.addf %36, %37 : vector<8x96xf32>
    %39 = vector.extract_strided_slice %35 {offsets = [0, 0], sizes = [8, 64], strides = [1, 1]} : vector<8x96xf32> to vector<8x64xf32>
    %40 = vector.extract_strided_slice %38 {offsets = [0, 0], sizes = [8, 64], strides = [1, 1]} : vector<8x96xf32> to vector<8x64xf32>
    %41 = arith.addf %39, %40 : vector<8x64xf32>
    %42 = arith.negf %41 : vector<8x64xf32>
    %43 = math.exp %42 : vector<8x64xf32>
    %cst_15 = arith.constant 1.000000e+00 : f32
    %44 = vector.broadcast %cst_15 : f32 to vector<8x64xf32>
    %45 = arith.addf %44, %43 : vector<8x64xf32>
    %46 = arith.divf %44, %45 : vector<8x64xf32>
    %47 = vector.extract_strided_slice %46 {offsets = [0, 0], sizes = [8, 32], strides = [1, 1]} : vector<8x64xf32> to vector<8x32xf32>
    %48 = vector.extract_strided_slice %46 {offsets = [0, 32], sizes = [8, 32], strides = [1, 1]} : vector<8x64xf32> to vector<8x32xf32>
    %49 = vector.extract_strided_slice %35 {offsets = [0, 64], sizes = [8, 32], strides = [1, 1]} : vector<8x96xf32> to vector<8x32xf32>
    %50 = vector.extract_strided_slice %38 {offsets = [0, 64], sizes = [8, 32], strides = [1, 1]} : vector<8x96xf32> to vector<8x32xf32>
    %51 = arith.mulf %47, %50 : vector<8x32xf32>
    %52 = arith.addf %49, %51 : vector<8x32xf32>
    %53 = math.tanh %52 : vector<8x32xf32>
    %cst_16 = arith.constant 1.000000e+00 : f32
    %54 = vector.broadcast %cst_16 : f32 to vector<8x32xf32>
    %55 = arith.subf %54, %48 : vector<8x32xf32>
    %56 = arith.mulf %55, %53 : vector<8x32xf32>
    %57 = arith.mulf %48, %33 : vector<8x32xf32>
    %58 = arith.addf %56, %57 : vector<8x32xf32>
    %c8 = arith.constant 8 : index
    %c0_17 = arith.constant 0 : index
    %59 = vector.load %arg8[%c8, %c0_17] : memref<64x32xf32, #tpu.memory_space<vmem>>, vector<8x32xf32>
    tpu.vector_store %arg8[%c8, %c0_17], %58 {strides = array<i32>} : memref<64x32xf32, #tpu.memory_space<vmem>>, vector<8x32xf32>,
    %60 = vector.extract_strided_slice %7 {offsets = [16, 0], sizes = [8, 96], strides = [1, 1]} : vector<64x96xf32> to vector<8x96xf32>
    %cst_18 = arith.constant dense<0.000000e+00> : vector<8x96xf32>
    %61 = tpu.matmul %58, %8, %cst_18 {dimension_numbers = #tpu.dot_dimension_numbers<[1], [0], [0], [1], [0, 0, 1, 1], [], []>} : vector<8x32xf32>, vector<32x96xf32>, vector<8x96xf32> -> vector<8x96xf32>
    %62 = vector.broadcast %2 : vector<1x96xf32> to vector<8x96xf32>
    %63 = arith.addf %61, %62 : vector<8x96xf32>
    %64 = vector.extract_strided_slice %60 {offsets = [0, 0], sizes = [8, 64], strides = [1, 1]} : vector<8x96xf32> to vector<8x64xf32>
    %65 = vector.extract_strided_slice %63 {offsets = [0, 0], sizes = [8, 64], strides = [1, 1]} : vector<8x96xf32> to vector<8x64xf32>
    %66 = arith.addf %64, %65 : vector<8x64xf32>
    %67 = arith.negf %66 : vector<8x64xf32>
    %68 = math.exp %67 : vector<8x64xf32>
    %cst_19 = arith.constant 1.000000e+00 : f32
    %69 = vector.broadcast %cst_19 : f32 to vector<8x64xf32>
    %70 = arith.addf %69, %68 : vector<8x64xf32>
    %71 = arith.divf %69, %70 : vector<8x64xf32>
    %72 = vector.extract_strided_slice %71 {offsets = [0, 0], sizes = [8, 32], strides = [1, 1]} : vector<8x64xf32> to vector<8x32xf32>
    %73 = vector.extract_strided_slice %71 {offsets = [0, 32], sizes = [8, 32], strides = [1, 1]} : vector<8x64xf32> to vector<8x32xf32>
    %74 = vector.extract_strided_slice %60 {offsets = [0, 64], sizes = [8, 32], strides = [1, 1]} : vector<8x96xf32> to vector<8x32xf32>
    %75 = vector.extract_strided_slice %63 {offsets = [0, 64], sizes = [8, 32], strides = [1, 1]} : vector<8x96xf32> to vector<8x32xf32>
    %76 = arith.mulf %72, %75 : vector<8x32xf32>
    %77 = arith.addf %74, %76 : vector<8x32xf32>
    %78 = math.tanh %77 : vector<8x32xf32>
    %cst_20 = arith.constant 1.000000e+00 : f32
    %79 = vector.broadcast %cst_20 : f32 to vector<8x32xf32>
    %80 = arith.subf %79, %73 : vector<8x32xf32>
    %81 = arith.mulf %80, %78 : vector<8x32xf32>
    %82 = arith.mulf %73, %58 : vector<8x32xf32>
    %83 = arith.addf %81, %82 : vector<8x32xf32>
    %c16 = arith.constant 16 : index
    %c0_21 = arith.constant 0 : index
    %84 = vector.load %arg8[%c16, %c0_21] : memref<64x32xf32, #tpu.memory_space<vmem>>, vector<8x32xf32>
    tpu.vector_store %arg8[%c16, %c0_21], %83 {strides = array<i32>} : memref<64x32xf32, #tpu.memory_space<vmem>>, vector<8x32xf32>,
    %85 = vector.extract_strided_slice %7 {offsets = [24, 0], sizes = [8, 96], strides = [1, 1]} : vector<64x96xf32> to vector<8x96xf32>
    %cst_22 = arith.constant dense<0.000000e+00> : vector<8x96xf32>
    %86 = tpu.matmul %83, %8, %cst_22 {dimension_numbers = #tpu.dot_dimension_numbers<[1], [0], [0], [1], [0, 0, 1, 1], [], []>} : vector<8x32xf32>, vector<32x96xf32>, vector<8x96xf32> -> vector<8x96xf32>
    %87 = vector.broadcast %2 : vector<1x96xf32> to vector<8x96xf32>
    %88 = arith.addf %86, %87 : vector<8x96xf32>
    %89 = vector.extract_strided_slice %85 {offsets = [0, 0], sizes = [8, 64], strides = [1, 1]} : vector<8x96xf32> to vector<8x64xf32>
    %90 = vector.extract_strided_slice %88 {offsets = [0, 0], sizes = [8, 64], strides = [1, 1]} : vector<8x96xf32> to vector<8x64xf32>
    %91 = arith.addf %89, %90 : vector<8x64xf32>
    %92 = arith.negf %91 : vector<8x64xf32>
    %93 = math.exp %92 : vector<8x64xf32>
    %cst_23 = arith.constant 1.000000e+00 : f32
    %94 = vector.broadcast %cst_23 : f32 to vector<8x64xf32>
    %95 = arith.addf %94, %93 : vector<8x64xf32>
    %96 = arith.divf %94, %95 : vector<8x64xf32>
    %97 = vector.extract_strided_slice %96 {offsets = [0, 0], sizes = [8, 32], strides = [1, 1]} : vector<8x64xf32> to vector<8x32xf32>
    %98 = vector.extract_strided_slice %96 {offsets = [0, 32], sizes = [8, 32], strides = [1, 1]} : vector<8x64xf32> to vector<8x32xf32>
    %99 = vector.extract_strided_slice %85 {offsets = [0, 64], sizes = [8, 32], strides = [1, 1]} : vector<8x96xf32> to vector<8x32xf32>
    %100 = vector.extract_strided_slice %88 {offsets = [0, 64], sizes = [8, 32], strides = [1, 1]} : vector<8x96xf32> to vector<8x32xf32>
    %101 = arith.mulf %97, %100 : vector<8x32xf32>
    %102 = arith.addf %99, %101 : vector<8x32xf32>
    %103 = math.tanh %102 : vector<8x32xf32>
    %cst_24 = arith.constant 1.000000e+00 : f32
    %104 = vector.broadcast %cst_24 : f32 to vector<8x32xf32>
    %105 = arith.subf %104, %98 : vector<8x32xf32>
    %106 = arith.mulf %105, %103 : vector<8x32xf32>
    %107 = arith.mulf %98, %83 : vector<8x32xf32>
    %108 = arith.addf %106, %107 : vector<8x32xf32>
    %c24 = arith.constant 24 : index
    %c0_25 = arith.constant 0 : index
    %109 = vector.load %arg8[%c24, %c0_25] : memref<64x32xf32, #tpu.memory_space<vmem>>, vector<8x32xf32>
    tpu.vector_store %arg8[%c24, %c0_25], %108 {strides = array<i32>} : memref<64x32xf32, #tpu.memory_space<vmem>>, vector<8x32xf32>,
    %110 = vector.extract_strided_slice %7 {offsets = [32, 0], sizes = [8, 96], strides = [1, 1]} : vector<64x96xf32> to vector<8x96xf32>
    %cst_26 = arith.constant dense<0.000000e+00> : vector<8x96xf32>
    %111 = tpu.matmul %108, %8, %cst_26 {dimension_numbers = #tpu.dot_dimension_numbers<[1], [0], [0], [1], [0, 0, 1, 1], [], []>} : vector<8x32xf32>, vector<32x96xf32>, vector<8x96xf32> -> vector<8x96xf32>
    %112 = vector.broadcast %2 : vector<1x96xf32> to vector<8x96xf32>
    %113 = arith.addf %111, %112 : vector<8x96xf32>
    %114 = vector.extract_strided_slice %110 {offsets = [0, 0], sizes = [8, 64], strides = [1, 1]} : vector<8x96xf32> to vector<8x64xf32>
    %115 = vector.extract_strided_slice %113 {offsets = [0, 0], sizes = [8, 64], strides = [1, 1]} : vector<8x96xf32> to vector<8x64xf32>
    %116 = arith.addf %114, %115 : vector<8x64xf32>
    %117 = arith.negf %116 : vector<8x64xf32>
    %118 = math.exp %117 : vector<8x64xf32>
    %cst_27 = arith.constant 1.000000e+00 : f32
    %119 = vector.broadcast %cst_27 : f32 to vector<8x64xf32>
    %120 = arith.addf %119, %118 : vector<8x64xf32>
    %121 = arith.divf %119, %120 : vector<8x64xf32>
    %122 = vector.extract_strided_slice %121 {offsets = [0, 0], sizes = [8, 32], strides = [1, 1]} : vector<8x64xf32> to vector<8x32xf32>
    %123 = vector.extract_strided_slice %121 {offsets = [0, 32], sizes = [8, 32], strides = [1, 1]} : vector<8x64xf32> to vector<8x32xf32>
    %124 = vector.extract_strided_slice %110 {offsets = [0, 64], sizes = [8, 32], strides = [1, 1]} : vector<8x96xf32> to vector<8x32xf32>
    %125 = vector.extract_strided_slice %113 {offsets = [0, 64], sizes = [8, 32], strides = [1, 1]} : vector<8x96xf32> to vector<8x32xf32>
    %126 = arith.mulf %122, %125 : vector<8x32xf32>
    %127 = arith.addf %124, %126 : vector<8x32xf32>
    %128 = math.tanh %127 : vector<8x32xf32>
    %cst_28 = arith.constant 1.000000e+00 : f32
    %129 = vector.broadcast %cst_28 : f32 to vector<8x32xf32>
    %130 = arith.subf %129, %123 : vector<8x32xf32>
    %131 = arith.mulf %130, %128 : vector<8x32xf32>
    %132 = arith.mulf %123, %108 : vector<8x32xf32>
    %133 = arith.addf %131, %132 : vector<8x32xf32>
    %c32 = arith.constant 32 : index
    %c0_29 = arith.constant 0 : index
    %134 = vector.load %arg8[%c32, %c0_29] : memref<64x32xf32, #tpu.memory_space<vmem>>, vector<8x32xf32>
    tpu.vector_store %arg8[%c32, %c0_29], %133 {strides = array<i32>} : memref<64x32xf32, #tpu.memory_space<vmem>>, vector<8x32xf32>,
    %135 = vector.extract_strided_slice %7 {offsets = [40, 0], sizes = [8, 96], strides = [1, 1]} : vector<64x96xf32> to vector<8x96xf32>
    %cst_30 = arith.constant dense<0.000000e+00> : vector<8x96xf32>
    %136 = tpu.matmul %133, %8, %cst_30 {dimension_numbers = #tpu.dot_dimension_numbers<[1], [0], [0], [1], [0, 0, 1, 1], [], []>} : vector<8x32xf32>, vector<32x96xf32>, vector<8x96xf32> -> vector<8x96xf32>
    %137 = vector.broadcast %2 : vector<1x96xf32> to vector<8x96xf32>
    %138 = arith.addf %136, %137 : vector<8x96xf32>
    %139 = vector.extract_strided_slice %135 {offsets = [0, 0], sizes = [8, 64], strides = [1, 1]} : vector<8x96xf32> to vector<8x64xf32>
    %140 = vector.extract_strided_slice %138 {offsets = [0, 0], sizes = [8, 64], strides = [1, 1]} : vector<8x96xf32> to vector<8x64xf32>
    %141 = arith.addf %139, %140 : vector<8x64xf32>
    %142 = arith.negf %141 : vector<8x64xf32>
    %143 = math.exp %142 : vector<8x64xf32>
    %cst_31 = arith.constant 1.000000e+00 : f32
    %144 = vector.broadcast %cst_31 : f32 to vector<8x64xf32>
    %145 = arith.addf %144, %143 : vector<8x64xf32>
    %146 = arith.divf %144, %145 : vector<8x64xf32>
    %147 = vector.extract_strided_slice %146 {offsets = [0, 0], sizes = [8, 32], strides = [1, 1]} : vector<8x64xf32> to vector<8x32xf32>
    %148 = vector.extract_strided_slice %146 {offsets = [0, 32], sizes = [8, 32], strides = [1, 1]} : vector<8x64xf32> to vector<8x32xf32>
    %149 = vector.extract_strided_slice %135 {offsets = [0, 64], sizes = [8, 32], strides = [1, 1]} : vector<8x96xf32> to vector<8x32xf32>
    %150 = vector.extract_strided_slice %138 {offsets = [0, 64], sizes = [8, 32], strides = [1, 1]} : vector<8x96xf32> to vector<8x32xf32>
    %151 = arith.mulf %147, %150 : vector<8x32xf32>
    %152 = arith.addf %149, %151 : vector<8x32xf32>
    %153 = math.tanh %152 : vector<8x32xf32>
    %cst_32 = arith.constant 1.000000e+00 : f32
    %154 = vector.broadcast %cst_32 : f32 to vector<8x32xf32>
    %155 = arith.subf %154, %148 : vector<8x32xf32>
    %156 = arith.mulf %155, %153 : vector<8x32xf32>
    %157 = arith.mulf %148, %133 : vector<8x32xf32>
    %158 = arith.addf %156, %157 : vector<8x32xf32>
    %c40 = arith.constant 40 : index
    %c0_33 = arith.constant 0 : index
    %159 = vector.load %arg8[%c40, %c0_33] : memref<64x32xf32, #tpu.memory_space<vmem>>, vector<8x32xf32>
    tpu.vector_store %arg8[%c40, %c0_33], %158 {strides = array<i32>} : memref<64x32xf32, #tpu.memory_space<vmem>>, vector<8x32xf32>,
    %160 = vector.extract_strided_slice %7 {offsets = [48, 0], sizes = [8, 96], strides = [1, 1]} : vector<64x96xf32> to vector<8x96xf32>
    %cst_34 = arith.constant dense<0.000000e+00> : vector<8x96xf32>
    %161 = tpu.matmul %158, %8, %cst_34 {dimension_numbers = #tpu.dot_dimension_numbers<[1], [0], [0], [1], [0, 0, 1, 1], [], []>} : vector<8x32xf32>, vector<32x96xf32>, vector<8x96xf32> -> vector<8x96xf32>
    %162 = vector.broadcast %2 : vector<1x96xf32> to vector<8x96xf32>
    %163 = arith.addf %161, %162 : vector<8x96xf32>
    %164 = vector.extract_strided_slice %160 {offsets = [0, 0], sizes = [8, 64], strides = [1, 1]} : vector<8x96xf32> to vector<8x64xf32>
    %165 = vector.extract_strided_slice %163 {offsets = [0, 0], sizes = [8, 64], strides = [1, 1]} : vector<8x96xf32> to vector<8x64xf32>
    %166 = arith.addf %164, %165 : vector<8x64xf32>
    %167 = arith.negf %166 : vector<8x64xf32>
    %168 = math.exp %167 : vector<8x64xf32>
    %cst_35 = arith.constant 1.000000e+00 : f32
    %169 = vector.broadcast %cst_35 : f32 to vector<8x64xf32>
    %170 = arith.addf %169, %168 : vector<8x64xf32>
    %171 = arith.divf %169, %170 : vector<8x64xf32>
    %172 = vector.extract_strided_slice %171 {offsets = [0, 0], sizes = [8, 32], strides = [1, 1]} : vector<8x64xf32> to vector<8x32xf32>
    %173 = vector.extract_strided_slice %171 {offsets = [0, 32], sizes = [8, 32], strides = [1, 1]} : vector<8x64xf32> to vector<8x32xf32>
    %174 = vector.extract_strided_slice %160 {offsets = [0, 64], sizes = [8, 32], strides = [1, 1]} : vector<8x96xf32> to vector<8x32xf32>
    %175 = vector.extract_strided_slice %163 {offsets = [0, 64], sizes = [8, 32], strides = [1, 1]} : vector<8x96xf32> to vector<8x32xf32>
    %176 = arith.mulf %172, %175 : vector<8x32xf32>
    %177 = arith.addf %174, %176 : vector<8x32xf32>
    %178 = math.tanh %177 : vector<8x32xf32>
    %cst_36 = arith.constant 1.000000e+00 : f32
    %179 = vector.broadcast %cst_36 : f32 to vector<8x32xf32>
    %180 = arith.subf %179, %173 : vector<8x32xf32>
    %181 = arith.mulf %180, %178 : vector<8x32xf32>
    %182 = arith.mulf %173, %158 : vector<8x32xf32>
    %183 = arith.addf %181, %182 : vector<8x32xf32>
    %c48 = arith.constant 48 : index
    %c0_37 = arith.constant 0 : index
    %184 = vector.load %arg8[%c48, %c0_37] : memref<64x32xf32, #tpu.memory_space<vmem>>, vector<8x32xf32>
    tpu.vector_store %arg8[%c48, %c0_37], %183 {strides = array<i32>} : memref<64x32xf32, #tpu.memory_space<vmem>>, vector<8x32xf32>,
    %185 = vector.extract_strided_slice %7 {offsets = [56, 0], sizes = [8, 96], strides = [1, 1]} : vector<64x96xf32> to vector<8x96xf32>
    %cst_38 = arith.constant dense<0.000000e+00> : vector<8x96xf32>
    %186 = tpu.matmul %183, %8, %cst_38 {dimension_numbers = #tpu.dot_dimension_numbers<[1], [0], [0], [1], [0, 0, 1, 1], [], []>} : vector<8x32xf32>, vector<32x96xf32>, vector<8x96xf32> -> vector<8x96xf32>
    %187 = vector.broadcast %2 : vector<1x96xf32> to vector<8x96xf32>
    %188 = arith.addf %186, %187 : vector<8x96xf32>
    %189 = vector.extract_strided_slice %185 {offsets = [0, 0], sizes = [8, 64], strides = [1, 1]} : vector<8x96xf32> to vector<8x64xf32>
    %190 = vector.extract_strided_slice %188 {offsets = [0, 0], sizes = [8, 64], strides = [1, 1]} : vector<8x96xf32> to vector<8x64xf32>
    %191 = arith.addf %189, %190 : vector<8x64xf32>
    %192 = arith.negf %191 : vector<8x64xf32>
    %193 = math.exp %192 : vector<8x64xf32>
    %cst_39 = arith.constant 1.000000e+00 : f32
    %194 = vector.broadcast %cst_39 : f32 to vector<8x64xf32>
    %195 = arith.addf %194, %193 : vector<8x64xf32>
    %196 = arith.divf %194, %195 : vector<8x64xf32>
    %197 = vector.extract_strided_slice %196 {offsets = [0, 0], sizes = [8, 32], strides = [1, 1]} : vector<8x64xf32> to vector<8x32xf32>
    %198 = vector.extract_strided_slice %196 {offsets = [0, 32], sizes = [8, 32], strides = [1, 1]} : vector<8x64xf32> to vector<8x32xf32>
    %199 = vector.extract_strided_slice %185 {offsets = [0, 64], sizes = [8, 32], strides = [1, 1]} : vector<8x96xf32> to vector<8x32xf32>
    %200 = vector.extract_strided_slice %188 {offsets = [0, 64], sizes = [8, 32], strides = [1, 1]} : vector<8x96xf32> to vector<8x32xf32>
    %201 = arith.mulf %197, %200 : vector<8x32xf32>
    %202 = arith.addf %199, %201 : vector<8x32xf32>
    %203 = math.tanh %202 : vector<8x32xf32>
    %cst_40 = arith.constant 1.000000e+00 : f32
    %204 = vector.broadcast %cst_40 : f32 to vector<8x32xf32>
    %205 = arith.subf %204, %198 : vector<8x32xf32>
    %206 = arith.mulf %205, %203 : vector<8x32xf32>
    %207 = arith.mulf %198, %183 : vector<8x32xf32>
    %208 = arith.addf %206, %207 : vector<8x32xf32>
    %c56 = arith.constant 56 : index
    %c0_41 = arith.constant 0 : index
    %209 = vector.load %arg8[%c56, %c0_41] : memref<64x32xf32, #tpu.memory_space<vmem>>, vector<8x32xf32>
    tpu.vector_store %arg8[%c56, %c0_41], %208 {strides = array<i32>} : memref<64x32xf32, #tpu.memory_space<vmem>>, vector<8x32xf32>,
    %c0_42 = arith.constant 0 : index
    %c0_43 = arith.constant 0 : index
    %210 = vector.load %arg8[%c0_42, %c0_43] : memref<64x32xf32, #tpu.memory_space<vmem>>, vector<64x32xf32>
    %c0_44 = arith.constant 0 : index
    %c0_45 = arith.constant 0 : index
    %211 = vector.load %arg5[%c0_44, %c0_45] : memref<32x128xf32, #tpu.memory_space<vmem>>, vector<32x128xf32>
    %cst_46 = arith.constant dense<0.000000e+00> : vector<64x128xf32>
    %212 = tpu.matmul %210, %211, %cst_46 {dimension_numbers = #tpu.dot_dimension_numbers<[1], [0], [0], [1], [0, 0, 1, 1], [], []>} : vector<64x32xf32>, vector<32x128xf32>, vector<64x128xf32> -> vector<64x128xf32>
    %c0_47 = arith.constant 0 : index
    %c0_48 = arith.constant 0 : index
    %213 = vector.load %arg6[%c0_47, %c0_48] : memref<1x128xf32, #tpu.memory_space<vmem>>, vector<1x128xf32>
    %214 = vector.broadcast %213 : vector<1x128xf32> to vector<64x128xf32>
    %215 = arith.addf %212, %214 : vector<64x128xf32>
    %c0_49 = arith.constant 0 : index
    %c0_50 = arith.constant 0 : index
    %216 = vector.load %arg7[%c0_49, %c0_50] : memref<64x128xf32, #tpu.memory_space<vmem>>, vector<64x128xf32>
    tpu.vector_store %arg7[%c0_49, %c0_50], %215 {strides = array<i32>} : memref<64x128xf32, #tpu.memory_space<vmem>>, vector<64x128xf32>,
    return
  }
}

</mosaic_0001>

<bundles_post_ra>
// kernel: tpu_custom_call.1
= control target key start
LH: loop header
LB: loop body
LE: loop exit
PB: predicated region body
PF: predicated region fallthrough
CT: control target
= control target key end

     0   :  { %12 = vsyncpa [#allocation4], 0  ;;  %s1832_s0 = inlined_call_operand.vmem [shape: f32[64,16], index: 0, kind: input, shape index: {}]   ;;  %s1833_s1 = inlined_call_operand.hbm [shape: f32[8,32], index: 1, kind: input, shape index: {}]   ;;  %s1834_s2 = inlined_call_operand.vmem [shape: f32[16,96], index: 2, kind: input, shape index: {}]   ;;  %s1835_s3 = inlined_call_operand.vmem [shape: f32[32,96], index: 3, kind: input, shape index: {}]   ;;  %s1836_s4 = inlined_call_operand.vmem [shape: f32[2,96], index: 4, kind: input, shape index: {}]   ;;  %s1837_s5 = inlined_call_operand.vmem [shape: f32[32,128], index: 5, kind: input, shape index: {}]   ;;  %s1838_s6 = inlined_call_operand.vmem [shape: f32[1,128], index: 6, kind: input, shape index: {}]   ;;  %s1839_s7 = inlined_call_operand.hbm [shape: f32[64,128], index: 7, kind: output, shape index: {}]  }
   0x1   :  { %13 = vsyncpa [#allocation5], 0  ;;  %s1519_s24 = smov [#allocation3]  }
   0x2   :  { %s22_s25 = sshll.u32 %s1519_s24, 4  ;;  %s23_s25 = int_to_ptr.vmem [resolvable:$true] %s22_s25 }
   0x3   :  { %s1483_s26 = scalar_lea.vmem %s23_s25, 128  ;;  %p1488_p1 = scmp.lt.s32.totalorder %s23_s25, %s23_s25 }
   0x4   :  { %p1484_p0 = scmp.ne.s32.totalorder %s23_s25, %s1483_s26  ;;  %p1489_p2 = scmp.lt.s32.totalorder %s1483_s26, %s1483_s26 }
   0x6   :  { %p1490_p3 = por %p1489_p2, %p1488_p1 }
   0x8   :  { %p1491_p4 = pnand %p1490_p3, %p1484_p0 }
   0xa   :  { %1494 = shalt.err (!%p1491_p4)
}
   0xb   :  { %25 = dma.hbm_to_vmem [thread:$0]  %s1833_s1, 128, %s23_s25, [#allocation4]  }
   0xc   :  { %1515 = dma.done.wait [#allocation4], 128  }
   0xd   :  { %1516 = vsyncadd [#allocation4], 4294967168  ;;  %vm54_vm0 = vcmask 130048   ;;  %v49_v0 = vld [vmem:[%s1834_s2 + $0x8] sm:$0xff]  ;;  %v48_v1 = vld [vmem:[%s1834_s2] sm:$0xff]  ;;  %v1520_v6 = vmov 0.0   ;;  %v50_v14 = vlaneseq }
   0xe   :  { %v44_v2 = vld [vmem:[%s1832_s0 + $0x20] sm:$0xff]  ;;  %1414 = vmatprep.subr.mxu1 %v49_v0  ;;  %v45_v3 = vld [vmem:[%s1832_s0 + $0x28] sm:$0xff]  ;;  %1290 = vmatprep.subr.mxu0 %v49_v0  ;;  %v1587_v4 = vld [vmem:[%s1835_s3 + $0x18] sm:$0xff]  ;;  %vm193_vm1 = vcmask 261120   ;;  %vm1521_vm2 = vmmov 0   ;;  %s1522_s29 = smov 64  }
   0xf   :  { %1300 = vmatprep.mubr.msk.f32.mxu1 %vm54_vm0, %v44_v2  ;;  %1416 = vmatpush3.msra.mxu1 %v49_v0  ;;  %v46_v5 = vld [vmem:[%s1832_s0 + $0x30] sm:$0xff]  ;;  %v40_v8 = vld [vmem:[%s1832_s0] sm:$0xff]  ;;  %v47_v9 = vld [vmem:[%s1832_s0 + $0x38] sm:$0xff]  ;;  %v51_v15 = vshrl.u32 %v50_v14, 7  ;;  %s1524_s30 = smov 32  }
  0x10   :  { %1415 = vmatprep.subr.mxu1 %v48_v1  ;;  %1291 = vmatpush3.msra.mxu0 %v49_v0  ;;  %v1597_v7 = vld [vmem:[%s1835_s3 + $0x10] sm:$0xff]  ;;  %v1611_v10 = vld [vmem:[%s1835_s3 + $0x8] sm:$0xff]  ;;  %v1623_v12 = vld [vmem:[%s1835_s3] sm:$0xff] }
  0x11   :  { %1417 = vmatpush3.msra.mxu1 %v48_v1  ;;  %1292 = vmatprep.subr.mxu0 %v48_v1  ;;  %v41_v11 = vld [vmem:[%s1832_s0 + $0x8] sm:$0xff]  ;;  %v188_v13 = vld [vmem:[#allocation3] sm:$0xff]  ;;  %v191_v17 = vsub.s32 1, %v51_v15  ;;  %v52_v27 = vsub.s32 0, %v51_v15  ;;  %v42_v61 = vld [vmem:[%s1832_s0 + $0x10] sm:$0xff] }
  0x12   :  { %1301 = vmatmul.mubr.msk.f32.vlgmr.msra.gmra.mxu1 %vm54_vm0, %v45_v3  ;;  %1306 = vmatprep.subr.mxu1 %v1520_v6  ;;  %v39_v19 = vld [vmem:[%s1836_s4] sm:$0x3]  ;;  %s1523_s4 = smov 96   ;;  %v43_v62 = vld [vmem:[%s1832_s0 + $0x18] sm:$0xff] }
  0x13   :  { %1307 = vmatpush3.msra.mxu1 %v1587_v4  ;;  %1303 = vmatprep.mubr.msk.f32.mxu1 %vm54_vm0, %v46_v5  ;;  %v1661_v21 = vrot.slane %v39_v19, %v191_v17  ;;  %v1667_v29 = vrot.slane %v39_v19, %v52_v27 }
  0x14   :  { %1308 = vmatprep.subr.mxu1 %v1520_v6  ;;  %1293 = vmatpush3.msra.mxu0 %v48_v1 }
  0x15   :  { %1309 = vmatpush3.msra.mxu1 %v1597_v7  ;;  %1294 = vmatprep.mubr.msk.f32.mxu0 %vm54_vm0, %v40_v8 }
  0x16   :  { %1304 = vmatmul.mubr.msk.f32.gmra.mxu1 %vm54_vm0, %v47_v9  ;;  %1310 = vmatprep.subr.mxu1 %v1520_v6 }
  0x17   :  { %1311 = vmatpush3.msra.mxu1 %v1611_v10  ;;  %1295 = vmatmul.mubr.msk.f32.vlgmr.msra.gmra.mxu0 %vm54_vm0, %v41_v11 }
  0x18   :  { %1312 = vmatprep.subr.mxu1 %v1520_v6  ;;  %1314 = vmatprep.mubr.msk.f32.mxu1 %vm1521_vm2, %v1520_v6 }
  0x19   :  { %1313 = vmatpush3.msra.mxu1 %v1623_v12  ;;  %1328 = vmatprep.subr.mxu0 %v1520_v6 }
  0x1a   :  { %1315 = vmatmul.mubr.msk.f32.vlgmr.msra.gmra.mxu1 %vm193_vm1, %v188_v13  ;;  %1317 = vmatprep.subr.mxu1 %v1520_v6 }
  0x1b   :  { %1318 = vmatpush3.msra.mxu1 %v1587_v4  ;;  %1325 = vmatprep.mubr.msk.f32.mxu1 %vm1521_vm2, %v1520_v6 }
  0x1c   :  { %1319 = vmatprep.subr.mxu1 %v1520_v6  ;;  %1329 = vmatpush3.msra.mxu0 %v1587_v4 }
  0x1d   :  { %1320 = vmatpush3.msra.mxu1 %v1597_v7  ;;  %1330 = vmatprep.subr.mxu0 %v1520_v6 }
  0x1e   :  { %1321 = vmatprep.subr.mxu1 %v1520_v6  ;;  %1331 = vmatpush3.msra.mxu0 %v1597_v7 }
  0x1f   :  { %1322 = vmatpush3.msra.mxu1 %v1611_v10  ;;  %1332 = vmatprep.subr.mxu0 %v1520_v6 }
  0x20   :  { %1323 = vmatprep.subr.mxu1 %v1520_v6  ;;  %1333 = vmatpush3.msra.mxu0 %v1611_v10 }
  0x21   :  { %1324 = vmatpush3.msra.mxu1 %v1623_v12  ;;  %1334 = vmatprep.subr.mxu0 %v1520_v6 }
  0x22   :  { %1335 = vmatpush3.msra.mxu0 %v1623_v12  ;;  %1339 = vmatprep.subr.mxu1 %v1520_v6 }
  0x23   :  { %1350 = vmatprep.subr.mxu0 %v1520_v6  ;;  %1297 = vmatprep.mubr.msk.f32.mxu0 %vm54_vm0, %v42_v61 }
  0x24   :  { %1298 = vmatmul.mubr.msk.f32.gmra.mxu0 %vm54_vm0, %v43_v62 }
  0x25   :  { %1336 = vmatprep.mubr.msk.f32.mxu0 %vm1521_vm2, %v1520_v6 }
  0xd2   :  { %v1652_v16 = vpop.f32.mrf.mxu1 }
  0xd4   :  { %v1654_v18 = vpop.f32.mrf.mxu1 }
  0xd5   :  { %v166_v62 = vadd.f32 %v1654_v18, %v1667_v29 }
  0xd6   :  { %v1659_v20 = vpop.f32.mrf.mxu1 }
  0xd7   :  { %v1296_v26 = vpop.f32.mrf.mxu0 }
  0xd8   :  { %v1663_v22 = vpop.f32.mrf.mxu1  ;;  %v151_v51 = vadd.f32 %v1296_v26, %v1667_v29 }
  0xd9   :  { %v145_v28 = vpop.f32.mrf.mxu0 }
  0xda   :  { %v263_v23 = vpop.f32.mrf.mxu1  ;;  %v146_v30 = vadd.f32 %v145_v28, %v1667_v29 }
  0xdb   :  { %v264_v24 = vadd.f32 %v263_v23, %v1661_v21 }
  0xdc   :  { %v1316_v25 = vpop.f32.mrf.mxu1 }
  0xdd   :  { %275 = vrot.lane.b32.xlu0 %v264_v24, %s1522_s29  ;;  %v267_v31 = vadd.f32 %v264_v24, %v146_v30 }
  0xdf   :  { %v1204_v32 = vmul.f32 -1.442695, %v267_v31 }
  0xe1   :  { %1427 = vpow2.f32 %v1204_v32 }
  0xe4   :  { %v1299_v9 = vpop.f32.mrf.mxu0 }
  0xe6   :  { %v155_v11 = vpop.f32.mrf.mxu0 }
  0xe7   :  { %v156_v17 = vadd.f32 %v155_v11, %v1667_v29 }
  0xee   :  { %v1428_v33 = vpop.eup %1427 }
  0xef   :  { %v271_v34 = vadd.f32 1.0, %v1428_v33 }
  0xf1   :  { %1429 = vrcp.f32 %v271_v34 }
  0xfe   :  { %v1430_v35 = vpop.eup %1429 }
  0xff   :  { %v285_v42 = vsub.f32 1.0, %v1430_v35 }
 0x14f   :  { %v276_v36 = vpop.permute.xlu0 %275 }
 0x150   :  { %v278_v37 = vmul.f32 %v1430_v35, %v276_v36 }
 0x152   :  { %280 = vrot.lane.b32.xlu0 %v278_v37, %s1522_s29 }
 0x1c4   :  { %v281_v38 = vpop.permute.xlu0 %280 }
 0x1c5   :  { %v283_v39 = vadd.f32 %v281_v38, %v146_v30 }
 0x1c7   :  { %1431 = vtanh.f32 %v283_v39 }
 0x1d4   :  { %v1432_v40 = vpop.eup %1431 }
 0x1d5   :  { %287 = vrot.lane.b32.xlu1 %v1432_v40, %s1523_s4 }
 0x1d9   :  { %291 = vrot.lane.b32.xlu1 %v188_v13, %s1524_s30 }
 0x247   :  { %v288_v41 = vpop.permute.xlu1 %287 }
 0x248   :  { %v290_v44 = vmul.f32 %v288_v41, %v285_v42  ;;  %v161_v42 = vadd.f32 %v1299_v9, %v1667_v29 }
 0x24b   :  { %v292_v43 = vpop.permute.xlu1 %291 }
 0x24c   :  { %v294_v45 = vmul.f32 %v1430_v35, %v292_v43 }
 0x24e   :  { %v295_v46 = vadd.f32 %v294_v45, %v290_v44 }
 0x250   :  { %297 = vrot.lane.b32.xlu0 %v295_v46, %s1523_s4 }
 0x2c2   :  { %v298_v47 = vpop.permute.xlu0 %297 }
 0x2c3   :  { %300 = vst.msk [vmem:[#allocation2] sm:$0xff] %vm193_vm1, %v298_v47  ;;  %1326 = vmatmul.mubr.msk.f32.vlgmr.msra.gmra.mxu1 %vm193_vm1, %v298_v47 }
 0x2c4   :  { %1340 = vmatpush3.msra.mxu1 %v1587_v4  ;;  %1347 = vmatprep.mubr.msk.f32.mxu1 %vm1521_vm2, %v1520_v6 }
 0x2c5   :  { %1341 = vmatprep.subr.mxu1 %v1520_v6 }
 0x2c6   :  { %1342 = vmatpush3.msra.mxu1 %v1597_v7 }
 0x2c7   :  { %1343 = vmatprep.subr.mxu1 %v1520_v6 }
 0x2c8   :  { %1344 = vmatpush3.msra.mxu1 %v1611_v10 }
 0x2c9   :  { %1345 = vmatprep.subr.mxu1 %v1520_v6 }
 0x2ca   :  { %1346 = vmatpush3.msra.mxu1 %v1623_v12 }
 0x2cb   :  { %1361 = vmatprep.subr.mxu1 %v1520_v6 }
 0x383   :  { %v369_v48 = vpop.f32.mrf.mxu1 }
 0x384   :  { %v370_v49 = vadd.f32 %v369_v48, %v1661_v21 }
 0x385   :  { %v1327_v50 = vpop.f32.mrf.mxu1 }
 0x386   :  { %381 = vrot.lane.b32.xlu1 %v370_v49, %s1522_s29  ;;  %v373_v52 = vadd.f32 %v370_v49, %v151_v51 }
 0x388   :  { %v1206_v53 = vmul.f32 -1.442695, %v373_v52 }
 0x38a   :  { %1433 = vpow2.f32 %v1206_v53 }
 0x397   :  { %v1434_v54 = vpop.eup %1433 }
 0x398   :  { %v377_v55 = vadd.f32 1.0, %v1434_v54 }
 0x39a   :  { %1435 = vrcp.f32 %v377_v55 }
 0x3a7   :  { %v1436_v56 = vpop.eup %1435 }
 0x3a8   :  { %v391_v0 = vsub.f32 1.0, %v1436_v56  ;;  %v397_v2 = vmul.f32 %v1436_v56, %v295_v46 }
 0x3f8   :  { %v382_v57 = vpop.permute.xlu1 %381 }
 0x3f9   :  { %v384_v58 = vmul.f32 %v1436_v56, %v382_v57 }
 0x3fb   :  { %386 = vrot.lane.b32.xlu0 %v384_v58, %s1522_s29 }
 0x46d   :  { %v387_v59 = vpop.permute.xlu0 %386 }
 0x46e   :  { %v389_v60 = vadd.f32 %v387_v59, %v151_v51 }
 0x470   :  { %1437 = vtanh.f32 %v389_v60 }
 0x47d   :  { %v1438_v63 = vpop.eup %1437 }
 0x47e   :  { %393 = vrot.lane.b32.xlu1 %v1438_v63, %s1523_s4 }
 0x4f0   :  { %v394_v1 = vpop.permute.xlu1 %393 }
 0x4f1   :  { %v396_v3 = vmul.f32 %v394_v1, %v391_v0 }
 0x4f3   :  { %v398_v5 = vadd.f32 %v397_v2, %v396_v3 }
 0x4f5   :  { %400 = vrot.lane.b32.xlu0 %v398_v5, %s1523_s4 }
 0x567   :  { %v401_v8 = vpop.permute.xlu0 %400 }
 0x568   :  { %403 = vst.msk [vmem:[#allocation2 + $0x8] sm:$0xff] %vm193_vm1, %v401_v8  ;;  %1337 = vmatmul.mubr.msk.f32.vlgmr.msra.gmra.mxu0 %vm193_vm1, %v401_v8 }
 0x569   :  { %1351 = vmatpush3.msra.mxu0 %v1587_v4  ;;  %1358 = vmatprep.mubr.msk.f32.mxu0 %vm1521_vm2, %v1520_v6 }
 0x56a   :  { %1352 = vmatprep.subr.mxu0 %v1520_v6 }
 0x56b   :  { %1353 = vmatpush3.msra.mxu0 %v1597_v7 }
 0x56c   :  { %1354 = vmatprep.subr.mxu0 %v1520_v6 }
 0x56d   :  { %1355 = vmatpush3.msra.mxu0 %v1611_v10 }
 0x56e   :  { %1356 = vmatprep.subr.mxu0 %v1520_v6 }
 0x56f   :  { %1357 = vmatpush3.msra.mxu0 %v1623_v12 }
 0x570   :  { %1372 = vmatprep.subr.mxu0 %v1520_v6 }
 0x628   :  { %v472_v13 = vpop.f32.mrf.mxu0 }
 0x629   :  { %v473_v14 = vadd.f32 %v472_v13, %v1661_v21 }
 0x62a   :  { %v1338_v15 = vpop.f32.mrf.mxu0 }
 0x62b   :  { %484 = vrot.lane.b32.xlu1 %v473_v14, %s1522_s29  ;;  %v476_v19 = vadd.f32 %v473_v14, %v156_v17 }
 0x62d   :  { %v1208_v23 = vmul.f32 -1.442695, %v476_v19 }
 0x62f   :  { %1439 = vpow2.f32 %v1208_v23 }
 0x63c   :  { %v1440_v24 = vpop.eup %1439 }
 0x63d   :  { %v480_v25 = vadd.f32 1.0, %v1440_v24 }
 0x63f   :  { %1441 = vrcp.f32 %v480_v25 }
 0x64c   :  { %v1442_v26 = vpop.eup %1441 }
 0x64d   :  { %v494_v33 = vsub.f32 1.0, %v1442_v26  ;;  %v500_v35 = vmul.f32 %v1442_v26, %v398_v5 }
 0x69d   :  { %v485_v27 = vpop.permute.xlu1 %484 }
 0x69e   :  { %v487_v28 = vmul.f32 %v1442_v26, %v485_v27 }
 0x6a0   :  { %489 = vrot.lane.b32.xlu0 %v487_v28, %s1522_s29 }
 0x712   :  { %v490_v30 = vpop.permute.xlu0 %489 }
 0x713   :  { %v492_v31 = vadd.f32 %v490_v30, %v156_v17 }
 0x715   :  { %1443 = vtanh.f32 %v492_v31 }
 0x722   :  { %v1444_v32 = vpop.eup %1443 }
 0x723   :  { %496 = vrot.lane.b32.xlu1 %v1444_v32, %s1523_s4 }
 0x795   :  { %v497_v34 = vpop.permute.xlu1 %496 }
 0x796   :  { %v499_v36 = vmul.f32 %v497_v34, %v494_v33  ;;  %v1033_v33 = vld [vmem:[%s1837_s5 + $0x18] sm:$0xff] }
 0x798   :  { %v501_v37 = vadd.f32 %v500_v35, %v499_v36 }
 0x79a   :  { %503 = vrot.lane.b32.xlu0 %v501_v37, %s1523_s4 }
 0x80c   :  { %v504_v38 = vpop.permute.xlu0 %503 }
 0x80d   :  { %506 = vst.msk [vmem:[#allocation2 + $0x10] sm:$0xff] %vm193_vm1, %v504_v38  ;;  %1348 = vmatmul.mubr.msk.f32.vlgmr.msra.gmra.mxu1 %vm193_vm1, %v504_v38 }
 0x80e   :  { %1362 = vmatpush3.msra.mxu1 %v1587_v4  ;;  %1369 = vmatprep.mubr.msk.f32.mxu1 %vm1521_vm2, %v1520_v6 }
 0x80f   :  { %1363 = vmatprep.subr.mxu1 %v1520_v6 }
 0x810   :  { %1364 = vmatpush3.msra.mxu1 %v1597_v7 }
 0x811   :  { %1365 = vmatprep.subr.mxu1 %v1520_v6 }
 0x812   :  { %1366 = vmatpush3.msra.mxu1 %v1611_v10 }
 0x813   :  { %1367 = vmatprep.subr.mxu1 %v1520_v6 }
 0x814   :  { %1368 = vmatpush3.msra.mxu1 %v1623_v12 }
 0x815   :  { %1383 = vmatprep.subr.mxu1 %v1520_v6 }
 0x8cd   :  { %v575_v39 = vpop.f32.mrf.mxu1 }
 0x8ce   :  { %v576_v40 = vadd.f32 %v575_v39, %v1661_v21 }
 0x8cf   :  { %v1349_v41 = vpop.f32.mrf.mxu1 }
 0x8d0   :  { %587 = vrot.lane.b32.xlu1 %v576_v40, %s1522_s29  ;;  %v579_v43 = vadd.f32 %v576_v40, %v161_v42  ;;  %v1032_v40 = vld [vmem:[%s1837_s5 + $0x10] sm:$0xff]  ;;  %v1022_v41 = vld [vmem:[#allocation2] sm:$0xff] }
 0x8d2   :  { %v1210_v44 = vmul.f32 -1.442695, %v579_v43  ;;  %v1030_v43 = vld [vmem:[%s1837_s5] sm:$0xff] }
 0x8d4   :  { %1445 = vpow2.f32 %v1210_v44  ;;  %v1023_v44 = vld [vmem:[#allocation2 + $0x8] sm:$0xff] }
 0x8e1   :  { %v1446_v45 = vpop.eup %1445 }
 0x8e2   :  { %v583_v46 = vadd.f32 1.0, %v1446_v45  ;;  %v1024_v45 = vld [vmem:[#allocation2 + $0x10] sm:$0xff] }
 0x8e4   :  { %1447 = vrcp.f32 %v583_v46 }
 0x8f1   :  { %v1448_v47 = vpop.eup %1447 }
 0x8f2   :  { %v597_v53 = vsub.f32 1.0, %v1448_v47  ;;  %v603_v55 = vmul.f32 %v1448_v47, %v501_v37 }
 0x942   :  { %v588_v48 = vpop.permute.xlu1 %587 }
 0x943   :  { %v590_v49 = vmul.f32 %v1448_v47, %v588_v48 }
 0x945   :  { %592 = vrot.lane.b32.xlu0 %v590_v49, %s1522_s29 }
 0x9b7   :  { %v593_v50 = vpop.permute.xlu0 %592 }
 0x9b8   :  { %v595_v51 = vadd.f32 %v593_v50, %v161_v42  ;;  %v1031_v42 = vld [vmem:[%s1837_s5 + $0x8] sm:$0xff] }
 0x9ba   :  { %1449 = vtanh.f32 %v595_v51 }
 0x9c7   :  { %v1450_v52 = vpop.eup %1449 }
 0x9c8   :  { %599 = vrot.lane.b32.xlu1 %v1450_v52, %s1523_s4  ;;  %v1801_v52 = vld [vmem:[%s1838_s6] ss:$0 sm:$0xff]  ;;  %s1525_s6 = smov [#allocation6]  }
 0x9c9   :  { %s1183_s18 = sshll.u32 %s1525_s6, 4  ;;  %s1184_s18 = int_to_ptr.vmem [resolvable:$true] %s1183_s18 }
 0x9ca   :  { %s1495_s19 = scalar_lea.vmem %s1184_s18, 1024  ;;  %p1500_p6 = scmp.lt.s32.totalorder %s1184_s18, %s1184_s18 }
 0x9cb   :  { %p1496_p5 = scmp.ne.s32.totalorder %s1184_s18, %s1495_s19  ;;  %p1501_p7 = scmp.lt.s32.totalorder %s1495_s19, %s1495_s19 }
 0x9cd   :  { %p1502_p8 = por %p1501_p7, %p1500_p6 }
 0x9cf   :  { %p1503_p9 = pnand %p1502_p8, %p1496_p5 }
 0xa3a   :  { %v600_v54 = vpop.permute.xlu1 %599 }
 0xa3b   :  { %v602_v56 = vmul.f32 %v600_v54, %v597_v53 }
 0xa3d   :  { %v604_v57 = vadd.f32 %v603_v55, %v602_v56 }
 0xa3f   :  { %606 = vrot.lane.b32.xlu0 %v604_v57, %s1523_s4 }
 0xab1   :  { %v607_v58 = vpop.permute.xlu0 %606 }
 0xab2   :  { %609 = vst.msk [vmem:[#allocation2 + $0x18] sm:$0xff] %vm193_vm1, %v607_v58  ;;  %1359 = vmatmul.mubr.msk.f32.vlgmr.msra.gmra.mxu0 %vm193_vm1, %v607_v58 }
 0xab3   :  { %1373 = vmatpush3.msra.mxu0 %v1587_v4  ;;  %1380 = vmatprep.mubr.msk.f32.mxu0 %vm1521_vm2, %v1520_v6 }
 0xab4   :  { %1374 = vmatprep.subr.mxu0 %v1520_v6 }
 0xab5   :  { %1375 = vmatpush3.msra.mxu0 %v1597_v7 }
 0xab6   :  { %1376 = vmatprep.subr.mxu0 %v1520_v6 }
 0xab7   :  { %1377 = vmatpush3.msra.mxu0 %v1611_v10 }
 0xab8   :  { %1378 = vmatprep.subr.mxu0 %v1520_v6 }
 0xab9   :  { %1379 = vmatpush3.msra.mxu0 %v1623_v12  ;;  %v1025_v46 = vld [vmem:[#allocation2 + $0x18] sm:$0xff] }
 0xaba   :  { %1394 = vmatprep.subr.mxu0 %v1033_v33 }
 0xb72   :  { %v678_v59 = vpop.f32.mrf.mxu0 }
 0xb73   :  { %v679_v60 = vadd.f32 %v678_v59, %v1661_v21 }
 0xb74   :  { %v1360_v61 = vpop.f32.mrf.mxu0 }
 0xb75   :  { %690 = vrot.lane.b32.xlu1 %v679_v60, %s1522_s29  ;;  %v682_v63 = vadd.f32 %v679_v60, %v166_v62 }
 0xb77   :  { %v1212_v0 = vmul.f32 -1.442695, %v682_v63 }
 0xb79   :  { %1451 = vpow2.f32 %v1212_v0 }
 0xb86   :  { %v1452_v1 = vpop.eup %1451 }
 0xb87   :  { %v686_v2 = vadd.f32 1.0, %v1452_v1  ;;  %v176_v1 = vadd.f32 %v1663_v22, %v1667_v29 }
 0xb89   :  { %1453 = vrcp.f32 %v686_v2 }
 0xb96   :  { %v1454_v3 = vpop.eup %1453 }
 0xb97   :  { %v700_v14 = vsub.f32 1.0, %v1454_v3  ;;  %v706_v18 = vmul.f32 %v1454_v3, %v604_v57 }
 0xbe7   :  { %v691_v5 = vpop.permute.xlu1 %690 }
 0xbe8   :  { %v693_v8 = vmul.f32 %v1454_v3, %v691_v5 }
 0xbea   :  { %695 = vrot.lane.b32.xlu0 %v693_v8, %s1522_s29 }
 0xc5c   :  { %v696_v9 = vpop.permute.xlu0 %695 }
 0xc5d   :  { %v698_v11 = vadd.f32 %v696_v9, %v166_v62 }
 0xc5f   :  { %1455 = vtanh.f32 %v698_v11 }
 0xc6c   :  { %v1456_v13 = vpop.eup %1455 }
 0xc6d   :  { %702 = vrot.lane.b32.xlu1 %v1456_v13, %s1523_s4 }
 0xcdf   :  { %v703_v15 = vpop.permute.xlu1 %702 }
 0xce0   :  { %v705_v17 = vmul.f32 %v703_v15, %v700_v14 }
 0xce2   :  { %v707_v19 = vadd.f32 %v706_v18, %v705_v17 }
 0xce4   :  { %709 = vrot.lane.b32.xlu0 %v707_v19, %s1523_s4 }
 0xd56   :  { %v710_v23 = vpop.permute.xlu0 %709 }
 0xd57   :  { %712 = vst.msk [vmem:[#allocation2 + $0x20] sm:$0xff] %vm193_vm1, %v710_v23  ;;  %1370 = vmatmul.mubr.msk.f32.vlgmr.msra.gmra.mxu1 %vm193_vm1, %v710_v23 }
 0xd58   :  { %1384 = vmatpush3.msra.mxu1 %v1587_v4  ;;  %1391 = vmatprep.mubr.msk.f32.mxu1 %vm1521_vm2, %v1520_v6  ;;  %v171_v4 = vadd.f32 %v1652_v16, %v1667_v29 }
 0xd59   :  { %1385 = vmatprep.subr.mxu1 %v1520_v6 }
 0xd5a   :  { %1386 = vmatpush3.msra.mxu1 %v1597_v7 }
 0xd5b   :  { %1387 = vmatprep.subr.mxu1 %v1520_v6 }
 0xd5c   :  { %1388 = vmatpush3.msra.mxu1 %v1611_v10 }
 0xd5d   :  { %1389 = vmatprep.subr.mxu1 %v1520_v6 }
 0xd5e   :  { %1390 = vmatpush3.msra.mxu1 %v1623_v12  ;;  %v1026_v47 = vld [vmem:[#allocation2 + $0x20] sm:$0xff] }
 0xe17   :  { %v781_v24 = vpop.f32.mrf.mxu1 }
 0xe18   :  { %v782_v25 = vadd.f32 %v781_v24, %v1661_v21 }
 0xe19   :  { %v1371_v26 = vpop.f32.mrf.mxu1 }
 0xe1a   :  { %793 = vrot.lane.b32.xlu1 %v782_v25, %s1522_s29  ;;  %v785_v27 = vadd.f32 %v782_v25, %v171_v4 }
 0xe1c   :  { %v1214_v28 = vmul.f32 -1.442695, %v785_v27 }
 0xe1e   :  { %1457 = vpow2.f32 %v1214_v28 }
 0xe2b   :  { %v1458_v7 = vpop.eup %1457 }
 0xe2c   :  { %v789_v30 = vadd.f32 1.0, %v1458_v7  ;;  %v181_v7 = vadd.f32 %v1659_v20, %v1667_v29 }
 0xe2e   :  { %1459 = vrcp.f32 %v789_v30 }
 0xe3b   :  { %v1460_v10 = vpop.eup %1459 }
 0xe3c   :  { %v803_v34 = vsub.f32 1.0, %v1460_v10  ;;  %v809_v36 = vmul.f32 %v1460_v10, %v707_v19 }
 0xe8c   :  { %v794_v31 = vpop.permute.xlu1 %793 }
 0xe8d   :  { %v796_v6 = vmul.f32 %v1460_v10, %v794_v31 }
 0xe8f   :  { %798 = vrot.lane.b32.xlu0 %v796_v6, %s1522_s29 }
 0xf01   :  { %v799_v12 = vpop.permute.xlu0 %798 }
 0xf02   :  { %v801_v32 = vadd.f32 %v799_v12, %v171_v4 }
 0xf04   :  { %1461 = vtanh.f32 %v801_v32 }
 0xf11   :  { %v1462_v16 = vpop.eup %1461 }
 0xf12   :  { %805 = vrot.lane.b32.xlu1 %v1462_v16, %s1523_s4 }
 0xf84   :  { %v806_v35 = vpop.permute.xlu1 %805 }
 0xf85   :  { %v808_v37 = vmul.f32 %v806_v35, %v803_v34 }
 0xf87   :  { %v1775_v38 = vadd.f32 %v809_v36, %v808_v37 }
 0xf89   :  { %812 = vrot.lane.b32.xlu0 %v1775_v38, %s1523_s4 }
 0xffb   :  { %v813_v39 = vpop.permute.xlu0 %812 }
 0xffc   :  { %815 = vst.msk [vmem:[#allocation2 + $0x28] sm:$0xff] %vm193_vm1, %v813_v39  ;;  %1381 = vmatmul.mubr.msk.f32.vlgmr.msra.gmra.mxu0 %vm193_vm1, %v813_v39 }
 0xffd   :  { %1395 = vmatpush3.msra.mxu0 %v1033_v33  ;;  %1402 = vmatprep.mubr.msk.f32.mxu0 %vm193_vm1, %v1022_v41 }
 0xffe   :  { %1396 = vmatprep.subr.mxu0 %v1032_v40 }
 0xfff   :  { %1397 = vmatpush3.msra.mxu0 %v1032_v40 }
0x1000   :  { %1398 = vmatprep.subr.mxu0 %v1031_v42 }
0x1001   :  { %1399 = vmatpush3.msra.mxu0 %v1031_v42 }
0x1002   :  { %1400 = vmatprep.subr.mxu0 %v1030_v43 }
0x1003   :  { %1401 = vmatpush3.msra.mxu0 %v1030_v43  ;;  %v1027_v48 = vld [vmem:[#allocation2 + $0x28] sm:$0xff] }
0x1004   :  { %1403 = vmatmul.mubr.msk.f32.vlgmr.msra.gmra.mxu0 %vm193_vm1, %v1023_v44 }
0x1005   :  { %1405 = vmatprep.mubr.msk.f32.mxu0 %vm193_vm1, %v1024_v45 }
0x1008   :  { %1406 = vmatmul.mubr.msk.f32.gmra.mxu0 %vm193_vm1, %v1025_v46 }
0x1009   :  { %1408 = vmatprep.mubr.msk.f32.mxu0 %vm193_vm1, %v1026_v47 }
0x100c   :  { %1409 = vmatmul.mubr.msk.f32.gmra.mxu0 %vm193_vm1, %v1027_v48 }
0x10bc   :  { %v884_v49 = vpop.f32.mrf.mxu0 }
0x10bd   :  { %v885_v50 = vadd.f32 %v884_v49, %v1661_v21 }
0x10be   :  { %v1382_v51 = vpop.f32.mrf.mxu0 }
0x10bf   :  { %896 = vrot.lane.b32.xlu1 %v885_v50, %s1522_s29  ;;  %v888_v2 = vadd.f32 %v885_v50, %v176_v1 }
0x10c1   :  { %v1216_v3 = vmul.f32 -1.442695, %v888_v2 }
0x10c3   :  { %1463 = vpow2.f32 %v1216_v3 }
0x10c4   :  { %v1404_v53 = vpop.f32.mrf.mxu0 }
0x10c5   :  { %v1137_v54 = vadd.f32 %v1404_v53, %v1801_v52 }
0x10c6   :  { %v1131_v55 = vpop.f32.mrf.mxu0 }
0x10c7   :  { %1171 = vst [vmem:[#allocation6 + $0x8] sm:$0xff] %v1137_v54  ;;  %v1132_v56 = vadd.f32 %v1801_v52, %v1131_v55 }
0x10c8   :  { %v1407_v57 = vpop.f32.mrf.mxu0 }
0x10c9   :  { %1170 = vst [vmem:[#allocation6] sm:$0xff] %v1132_v56  ;;  %v1147_v58 = vadd.f32 %v1407_v57, %v1801_v52 }
0x10ca   :  { %v1141_v59 = vpop.f32.mrf.mxu0 }
0x10cb   :  { %1173 = vst [vmem:[#allocation6 + $0x18] sm:$0xff] %v1147_v58  ;;  %v1142_v60 = vadd.f32 %v1801_v52, %v1141_v59 }
0x10cc   :  { %v1410_v61 = vpop.f32.mrf.mxu0 }
0x10cd   :  { %1172 = vst [vmem:[#allocation6 + $0x10] sm:$0xff] %v1142_v60  ;;  %v1157_v62 = vadd.f32 %v1410_v61, %v1801_v52 }
0x10ce   :  { %v1151_v63 = vpop.f32.mrf.mxu0 }
0x10cf   :  { %1175 = vst [vmem:[#allocation6 + $0x28] sm:$0xff] %v1157_v62  ;;  %v1152_v0 = vadd.f32 %v1801_v52, %v1151_v63 }
0x10d0   :  { %v1464_v5 = vpop.eup %1463 }
0x10d1   :  { %1174 = vst [vmem:[#allocation6 + $0x20] sm:$0xff] %v1152_v0  ;;  %v892_v8 = vadd.f32 1.0, %v1464_v5 }
0x10d3   :  { %1465 = vrcp.f32 %v892_v8 }
0x10e0   :  { %v1466_v9 = vpop.eup %1465 }
0x10e1   :  { %v906_v17 = vsub.f32 1.0, %v1466_v9  ;;  %v912_v22 = vmul.f32 %v1466_v9, %v1775_v38 }
0x1131   :  { %v897_v11 = vpop.permute.xlu1 %896 }
0x1132   :  { %v899_v13 = vmul.f32 %v1466_v9, %v897_v11 }
0x1134   :  { %901 = vrot.lane.b32.xlu0 %v899_v13, %s1522_s29 }
0x11a6   :  { %v902_v14 = vpop.permute.xlu0 %901 }
0x11a7   :  { %v904_v15 = vadd.f32 %v902_v14, %v176_v1 }
0x11a9   :  { %1467 = vtanh.f32 %v904_v15 }
0x11b6   :  { %v1468_v18 = vpop.eup %1467 }
0x11b7   :  { %908 = vrot.lane.b32.xlu1 %v1468_v18, %s1523_s4 }
0x1229   :  { %v909_v19 = vpop.permute.xlu1 %908 }
0x122a   :  { %v911_v23 = vmul.f32 %v909_v19, %v906_v17 }
0x122c   :  { %v913_v24 = vadd.f32 %v912_v22, %v911_v23 }
0x122e   :  { %915 = vrot.lane.b32.xlu0 %v913_v24, %s1523_s4 }
0x12a0   :  { %v916_v25 = vpop.permute.xlu0 %915 }
0x12a1   :  { %918 = vst.msk [vmem:[#allocation2 + $0x30] sm:$0xff] %vm193_vm1, %v916_v25  ;;  %1392 = vmatmul.mubr.msk.f32.vlgmr.msra.gmra.mxu1 %vm193_vm1, %v916_v25 }
0x12a8   :  { %v1028_v26 = vld [vmem:[#allocation2 + $0x30] sm:$0xff] }
0x12a9   :  { %1411 = vmatprep.mubr.msk.f32.mxu0 %vm193_vm1, %v1028_v26 }
0x1361   :  { %v987_v4 = vpop.f32.mrf.mxu1 }
0x1362   :  { %v988_v27 = vadd.f32 %v987_v4, %v1661_v21 }
0x1363   :  { %v1393_v28 = vpop.f32.mrf.mxu1 }
0x1364   :  { %999 = vrot.lane.b32.xlu1 %v988_v27, %s1522_s29  ;;  %v991_v30 = vadd.f32 %v988_v27, %v181_v7 }
0x1366   :  { %v1218_v10 = vmul.f32 -1.442695, %v991_v30 }
0x1368   :  { %1469 = vpow2.f32 %v1218_v10 }
0x1375   :  { %v1470_v31 = vpop.eup %1469 }
0x1376   :  { %v995_v6 = vadd.f32 1.0, %v1470_v31 }
0x1378   :  { %1471 = vrcp.f32 %v995_v6 }
0x1385   :  { %v1472_v12 = vpop.eup %1471 }
0x1386   :  { %v1009_v35 = vsub.f32 1.0, %v1472_v12  ;;  %v1015_v20 = vmul.f32 %v1472_v12, %v913_v24 }
0x13d6   :  { %v1000_v32 = vpop.permute.xlu1 %999 }
0x13d7   :  { %v1002_v33 = vmul.f32 %v1472_v12, %v1000_v32 }
0x13d9   :  { %1004 = vrot.lane.b32.xlu0 %v1002_v33, %s1522_s29 }
0x144b   :  { %v1005_v16 = vpop.permute.xlu0 %1004 }
0x144c   :  { %v1007_v34 = vadd.f32 %v1005_v16, %v181_v7 }
0x144e   :  { %1473 = vtanh.f32 %v1007_v34 }
0x145b   :  { %v1474_v21 = vpop.eup %1473 }
0x145c   :  { %1011 = vrot.lane.b32.xlu1 %v1474_v21, %s1523_s4 }
0x14ce   :  { %v1012_v36 = vpop.permute.xlu1 %1011 }
0x14cf   :  { %v1014_v29 = vmul.f32 %v1012_v36, %v1009_v35 }
0x14d1   :  { %v1016_v37 = vadd.f32 %v1015_v20, %v1014_v29 }
0x14d3   :  { %1018 = vrot.lane.b32.xlu0 %v1016_v37, %s1523_s4 }
0x1545   :  { %v1019_v38 = vpop.permute.xlu0 %1018 }
0x1546   :  { %1021 = vst.msk [vmem:[#allocation2 + $0x38] sm:$0xff] %vm193_vm1, %v1019_v38 }
0x154d   :  { %v1029_v39 = vld [vmem:[#allocation2 + $0x38] sm:$0xff] }
0x154e   :  { %1412 = vmatmul.mubr.msk.f32.gmra.mxu0 %vm193_vm1, %v1029_v39 }
0x160e   :  { %v1413_v40 = vpop.f32.mrf.mxu0 }
0x160f   :  { %v1167_v41 = vadd.f32 %v1413_v40, %v1801_v52 }
0x1610   :  { %v1161_v42 = vpop.f32.mrf.mxu0 }
0x1611   :  { %1177 = vst [vmem:[#allocation6 + $0x38] sm:$0xff] %v1167_v41  ;;  %v1162_v43 = vadd.f32 %v1801_v52, %v1161_v42 }
0x1613   :  { %1176 = vst [vmem:[#allocation6 + $0x30] sm:$0xff] %v1162_v43 }
0x1614   :  { %1506 = shalt.err (!%p1503_p9)
}
0x1615   :  { %s1526_s20 = smov 128   ;;  %s1527_s21 = smov 8  }
0x1616   :  { %1189 = dma.vmem_to_hbm [thread:$0]  %s1184_s18, 1024, %s1839_s7, [#allocation5], %s1526_s20, %s1526_s20, %s1527_s21  }
0x1617   :  { %1517 = dma.done.wait [#allocation5], 1024  }
0x1618   :  { %1518 = vsyncadd [#allocation5], 4294966272 }
0x1619   :  { %1193 = vsyncpa [#allocation4], 1 }
0x161a   :  { %1194 = vsyncpa [#allocation5], 1 }

</bundles_post_ra>
